<compile_context>
chip_gen: v5e
topology: v5e:2x2
jax: 0.10.0
libtpu: 0.0.40
codegen_flags: <defaults>
</compile_context>

<pallas_src>
import functools
import math

import jax
import jax.numpy as jnp
from jax.experimental import pallas as pl
from jax.experimental.pallas import tpu as pltpu

_LANE = 128
_MAX_BLOCK_ROWS = 512  # (512, 128) f32 tile = 256 KiB -> comfortably fits v7x VMEM budget


def _scalar_total_loss_kernel(s_ref, c_ref, o_ref, *, ws, wc):
    """Scalar-core path: all refs are SMEM (1,) f32."""
    o_ref[0] = ws * s_ref[0] + wc * c_ref[0]


def _elementwise_total_loss_kernel(s_ref, c_ref, o_ref, *, ws, wc):
    """VPU path on a (block_rows, 128) tile; compute in f32, store native dtype."""
    s = s_ref[...].astype(jnp.float32)
    c = c_ref[...].astype(jnp.float32)
    o_ref[...] = (ws * s + wc * c).astype(o_ref.dtype)


class TransferTotalLossPallas:
    """JAX/Pallas equivalent of the PyTorch TransferTotalLoss module.

    Weights are fixed Python floats supplied at construction (as in the PyTorch
    __init__), so they are baked into the kernels as compile-time constants.
    """

    def __init__(self, weight_style_loss, weight_content_loss):
        self.weight_style_loss = float(weight_style_loss)
        self.weight_content_loss = float(weight_content_loss)

    # ---- scalar (0-d / single element) path: SMEM, no vector DMA -------------------
    def _scalar_path(self, s, c, out_dtype, out_shape):
        kernel = functools.partial(
            _scalar_total_loss_kernel,
            ws=self.weight_style_loss,
            wc=self.weight_content_loss,
        )
        out = pl.pallas_call(
            kernel,
            out_shape=jax.ShapeDtypeStruct((1,), jnp.float32),
            in_specs=[
                pl.BlockSpec(memory_space=pltpu.SMEM),
                pl.BlockSpec(memory_space=pltpu.SMEM),
            ],
            out_specs=pl.BlockSpec(memory_space=pltpu.SMEM),
        )(
            s.reshape(1).astype(jnp.float32),
            c.reshape(1).astype(jnp.float32),
        )
        return out[0].astype(out_dtype).reshape(out_shape)

    # ---- tensor (elementwise) path: tiled, pipelined, lane/sublane dense -----------
    def _tensor_path(self, s, c, out_dtype, out_shape):
        n = s.size
        s_flat = s.reshape(-1).astype(out_dtype)
        c_flat = c.reshape(-1).astype(out_dtype)

        rows = pl.cdiv(n, _LANE)
        # Block rows: multiple of 8 (full sublanes), capped at 512 for v7x VMEM headroom.
        block_rows = min(_MAX_BLOCK_ROWS, ((rows + 7) // 8) * 8)
        padded_rows = pl.cdiv(rows, block_rows) * block_rows
        n_pad = padded_rows * _LANE
        if n_pad != n:
            s_flat = jnp.pad(s_flat, (0, n_pad - n))
            c_flat = jnp.pad(c_flat, (0, n_pad - n))
        s2 = s_flat.reshape(padded_rows, _LANE)
        c2 = c_flat.reshape(padded_rows, _LANE)

        itemsize = jnp.dtype(out_dtype).itemsize
        cost = pl.CostEstimate(
            flops=3 * n_pad,
            transcendentals=0,
            bytes_accessed=3 * n_pad * itemsize,  # 2 reads + 1 write
        )
        kernel = functools.partial(
            _elementwise_total_loss_kernel,
            ws=self.weight_style_loss,
            wc=self.weight_content_loss,
        )
        out = pl.pallas_call(
            kernel,
            out_shape=jax.ShapeDtypeStruct((padded_rows, _LANE), out_dtype),
            grid=(padded_rows // block_rows,),
            in_specs=[
                pl.BlockSpec((block_rows, _LANE), lambda i: (i, 0)),
                pl.BlockSpec((block_rows, _LANE), lambda i: (i, 0)),
            ],
            out_specs=pl.BlockSpec((block_rows, _LANE), lambda i: (i, 0)),
            input_output_aliases={0: 0},  # donate the (temporary) style slab as output
            compiler_params=pltpu.CompilerParams(
                dimension_semantics=("parallel",),
            ),
            cost_estimate=cost,
        )(s2, c2)
        return out.reshape(-1)[:n].reshape(out_shape)

    def __call__(self, style_loss, content_loss):
        s = jnp.asarray(style_loss)
        c = jnp.asarray(content_loss)

        out_dtype = jnp.promote_types(s.dtype, c.dtype)
        if not jnp.issubdtype(out_dtype, jnp.floating):
            out_dtype = jnp.float32

        # Match PyTorch broadcasting semantics of `w*s + w*c`.
        out_shape = jnp.broadcast_shapes(s.shape, c.shape)
        s = jnp.broadcast_to(s, out_shape)
        c = jnp.broadcast_to(c, out_shape)

        n = math.prod(out_shape) if out_shape else 1
        if n <= 1:
            return self._scalar_path(s, c, out_dtype, out_shape)
        return self._tensor_path(s, c, out_dtype, out_shape)


if __name__ == "__main__":
    key = jax.random.PRNGKey(0)
    k_style, k_content = jax.random.split(key)

    style_map = jax.random.normal(k_style, (2, 4, 16, 16), dtype=jnp.float32)
    content_map = jax.random.normal(k_content, (2, 4, 16, 16), dtype=jnp.float32)

    # Scalar losses, mirroring how a style-transfer pipeline feeds this module.
    style_loss = jnp.mean(style_map ** 2)
    content_loss = jnp.mean(content_map ** 2)

    weight_style_loss = 1000.0
    weight_content_loss = 1.0

    total_loss_fn = TransferTotalLossPallas(weight_style_loss, weight_content_loss)

    # --- scalar (0-d) path --------------------------------------------------------
    tot = jax.block_until_ready(total_loss_fn(style_loss, content_loss))
    ref = weight_style_loss * style_loss + weight_content_loss * content_loss
    assert tot.shape == ref.shape
    assert jnp.allclose(tot, ref, rtol=1e-6, atol=1e-6), (tot, ref)

    # --- tensor (elementwise) path, f32 -------------------------------------------
    tot_map = jax.block_until_ready(total_loss_fn(style_map, content_map))
    ref_map = weight_style_loss * style_map + weight_content_loss * content_map
    assert tot_map.shape == ref_map.shape
    assert tot_map.dtype == ref_map.dtype
    assert jnp.allclose(tot_map, ref_map, rtol=1e-6, atol=1e-6)

    # --- tensor path keeps native dtype (bf16) -------------------------------------
    style_bf16 = style_map.astype(jnp.bfloat16)
    content_bf16 = content_map.astype(jnp.bfloat16)
    tot_bf16 = jax.block_until_ready(total_loss_fn(style_bf16, content_bf16))
    ref_bf16 = (
        weight_style_loss * style_bf16.astype(jnp.float32)
        + weight_content_loss * content_bf16.astype(jnp.float32)
    ).astype(jnp.bfloat16)
    assert tot_bf16.dtype == jnp.bfloat16
    assert jnp.allclose(
        tot_bf16.astype(jnp.float32), ref_bf16.astype(jnp.float32), rtol=2e-2, atol=2e-2
    )

    print("KERNEL_OK")
</pallas_src>

<mosaic_0001>
module attributes {stable_mosaic.version = 11 : i64} {
  func.func @_scalar_total_loss_kernel(%arg0: memref<1xf32, #tpu.memory_space<smem>>, %arg1: memref<1xf32, #tpu.memory_space<smem>>, %arg2: memref<1xf32, #tpu.memory_space<smem>>) attributes {dimension_semantics = [], scalar_prefetch = 0 : i64, scratch_operands = 0 : i64, tpu.core_type = #tpu.core_type<tc>} {
    %c0 = arith.constant 0 : index
    %0 = memref.load %arg0[%c0] : memref<1xf32, #tpu.memory_space<smem>>
    %cst = arith.constant 1.000000e+03 : f32
    %1 = arith.mulf %cst, %0 : f32
    %c0_0 = arith.constant 0 : index
    %2 = memref.load %arg1[%c0_0] : memref<1xf32, #tpu.memory_space<smem>>
    %cst_1 = arith.constant 1.000000e+00 : f32
    %3 = arith.mulf %cst_1, %2 : f32
    %4 = arith.addf %1, %3 : f32
    %c0_2 = arith.constant 0 : index
    %5 = memref.load %arg2[%c0_2] : memref<1xf32, #tpu.memory_space<smem>>
    memref.store %4, %arg2[%c0_2] : memref<1xf32, #tpu.memory_space<smem>>
    return
  }
}

</mosaic_0001>

<bundles_post_ra>
// kernel: tpu_custom_call.1
= control target key start
LH: loop header
LB: loop body
LE: loop exit
PB: predicated region body
PF: predicated region fallthrough
CT: control target
= control target key end

     0   :  { %9 = vsyncpa [#allocation5], 0  ;;  %s50_s18 = smov [#allocation4]   ;;  %s75_s0 = inlined_call_operand.<no memory space> [shape: f32[1], index: 0, kind: input, shape index: {}]   ;;  %s76_s1 = inlined_call_operand.<no memory space> [shape: f32[1], index: 1, kind: input, shape index: {}]   ;;  %s77_s2 = inlined_call_operand.hbm [shape: f32[1], index: 2, kind: output, shape index: {}]  }
   0x1   :  { %s15_s11 = smul.f32 1000.0, %s75_s0  ;;  %s25_s14 = sshll.u32 %s77_s2, 4  ;;  %s26_s14 = int_to_ptr.hbm [resolvable:$true] %s25_s14 }
   0x3   :  { %s17_s17 = sadd.f32 %s15_s11, %s76_s1 }
   0x5   :  { %19 = sst [smem:[#allocation4]] %s17_s17 }
   0x6   :  { %28 = dma.smem_to_hbm %s50_s18, 16, %s26_s14, [#allocation5]  }
   0x7   :  { %48 = dma.done.wait [#allocation5], 16  }
   0x8   :  { %49 = vsyncadd [#allocation5], 4294967280 }
   0x9   :  { %33 = sfence }
   0xa   :  { %34 = vsyncpa [#allocation5], 1 }

</bundles_post_ra>
